<compile_context>
chip_gen: v6e
topology: v6e:2x2x1
jax: 0.10.0
libtpu: 0.0.40
codegen_flags: <defaults>
</compile_context>

<pallas_src>
import numpy as np

import jax
import jax.numpy as jnp
from jax.experimental import pallas as pl
from jax.experimental.pallas import tpu as pltpu


# Below this size a single HBM->HBM DMA is used; at/above it, the lane-dense
# tiled (megacore-parallel) copy is used.
_TILED_THRESHOLD_BYTES = 8 * 1024 * 1024
# Per-buffer VMEM budget for a tile in the tiled path (double-buffered in+out
# => ~4x this in flight, safely under v5e's 16 MiB scoped-VMEM default).
_TILE_BYTES = 2 * 1024 * 1024


# ---------------------------------------------------------------------------
# Cold path #1 (small Z): one HBM -> HBM DMA.  No VMEM round trip, no grid.
# ---------------------------------------------------------------------------
def _hbm_copy_kernel(z_hbm_ref, o_hbm_ref, sem):
    cp = pltpu.make_async_copy(z_hbm_ref, o_hbm_ref, sem)
    cp.start()
    cp.wait()


def _materialize_small(z):
    return pl.pallas_call(
        _hbm_copy_kernel,
        out_shape=jax.ShapeDtypeStruct(z.shape, z.dtype),
        in_specs=[pl.BlockSpec(memory_space=pl.ANY)],
        out_specs=pl.BlockSpec(memory_space=pl.ANY),
        scratch_shapes=[pltpu.SemaphoreType.DMA],
        compiler_params=pltpu.CompilerParams(has_side_effects=True),
    )(z)


# ---------------------------------------------------------------------------
# Cold path #2 (large Z): lane-dense tiled copy, 1-D parallel grid.
# ---------------------------------------------------------------------------
def _tiled_copy_kernel(z_ref, o_ref):
    o_ref[...] = z_ref[...]


def _materialize_tiled(z):
    orig_shape = z.shape
    if z.ndim == 1:
        z2 = z.reshape(1, z.shape[0])
    else:
        z2 = z.reshape(-1, z.shape[-1])
    rows, d = z2.shape
    itemsize = jnp.dtype(z2.dtype).itemsize

    # Rows per block: as many as fit the per-buffer budget (>= 512 for typical
    # latent widths, per measured per-grid-step overhead), multiple of 8.
    rows_budget = max(8, _TILE_BYTES // max(1, d * itemsize))
    tm = min(rows, rows_budget)
    if tm < rows:
        tm = max(8, (tm // 8) * 8)

    grid = (pl.cdiv(rows, tm),)
    out = pl.pallas_call(
        _tiled_copy_kernel,
        out_shape=jax.ShapeDtypeStruct((rows, d), z2.dtype),
        grid=grid,
        in_specs=[pl.BlockSpec((tm, d), lambda i: (i, 0))],
        out_specs=pl.BlockSpec((tm, d), lambda i: (i, 0)),
        compiler_params=pltpu.CompilerParams(
            dimension_semantics=("parallel",),
        ),
    )(z2)
    return out.reshape(orig_shape)


def latent_code_materialize(z, force_tiled=False):
    """Explicit on-device materialization of the latent code (cold path only).

    The hot path of LatentCode.forward() never calls this: an identity kernel
    can never beat returning the parameter.  If a consumer kernel needs Z,
    prefer fusing it as an extra input of that kernel's BlockSpecs.
    """
    nbytes = int(np.prod(z.shape)) * jnp.dtype(z.dtype).itemsize
    if force_tiled or nbytes >= _TILED_THRESHOLD_BYTES:
        return _materialize_tiled(z)
    return _materialize_small(z)


class LatentCode:
    """JAX/Pallas port of the PyTorch LatentCode module.

    forward() matches the PyTorch semantics exactly (returns the trainable
    latent code) and does NOT launch a kernel.  materialize() provides an
    explicit Pallas-materialized copy when one is required.
    """

    def __init__(self, Z_real, dtype=None):
        # In PyTorch this is an nn.Parameter initialized directly from Z_real.
        z = jnp.asarray(Z_real)
        if dtype is not None:
            # Optional one-time cast (e.g. bf16) to halve downstream HBM reads.
            z = z.astype(dtype)
        self.trainable_layers = z

    def forward(self):
        # Optimal hot path: identity over the parameter — no kernel launch.
        return self.trainable_layers

    def materialize(self, force_tiled=False):
        return latent_code_materialize(self.trainable_layers, force_tiled)

    __call__ = forward


if __name__ == "__main__":
    # Small latent-code shape: batch=2, n_layers=8, latent_dim=128
    # (last dim = 128 keeps everything lane-dense on TPU).
    key = jax.random.PRNGKey(0)
    Z_real = jax.random.normal(key, (2, 8, 128), dtype=jnp.float32)
    Z_host = np.asarray(Z_real)  # host reference copy

    module = LatentCode(Z_real)

    # 1) Zero-cost forward path (semantics of the PyTorch module).
    out_fast = jax.block_until_ready(module())
    assert out_fast.shape == Z_real.shape and out_fast.dtype == Z_real.dtype
    assert np.array_equal(np.asarray(out_fast), Z_host)

    # 2) Cold path, small Z: single HBM->HBM DMA kernel.
    out_dma = jax.block_until_ready(module.materialize())
    assert out_dma.shape == Z_real.shape and out_dma.dtype == Z_real.dtype
    assert np.array_equal(np.asarray(out_dma), Z_host)

    # 3) Cold path, large-Z code path (forced here at small shape so both
    #    kernels are compile/run-checked): lane-dense tiled parallel copy.
    out_tiled = jax.block_until_ready(module.materialize(force_tiled=True))
    assert out_tiled.shape == Z_real.shape and out_tiled.dtype == Z_real.dtype
    assert np.array_equal(np.asarray(out_tiled), Z_host)

    print("KERNEL_OK")
</pallas_src>

<mosaic_0001>
module attributes {stable_mosaic.version = 11 : i64} {
  func.func @_hbm_copy_kernel(%arg0: memref<2x8x128xf32, #tpu.memory_space<any>>, %arg1: memref<2x8x128xf32, #tpu.memory_space<any>>, %arg2: memref<!tpu.dma_semaphore, #tpu.memory_space<semaphore_mem>>) attributes {dimension_semantics = [], scalar_prefetch = 0 : i64, scratch_operands = 1 : i64, tpu.core_type = #tpu.core_type<tc>} {
    tpu.enqueue_dma source(%arg0 : memref<2x8x128xf32, #tpu.memory_space<any>>) target(%arg1 : memref<2x8x128xf32, #tpu.memory_space<any>>) target_semaphore(%arg2 : memref<!tpu.dma_semaphore, #tpu.memory_space<semaphore_mem>>)
    tpu.wait_dma2 semaphore(%arg2 : memref<!tpu.dma_semaphore, #tpu.memory_space<semaphore_mem>>) src(%arg0 : memref<2x8x128xf32, #tpu.memory_space<any>>) dst(%arg1 : memref<2x8x128xf32, #tpu.memory_space<any>>)
    return
  }
}

</mosaic_0001>

<bundles_post_ra>
// kernel: tpu_custom_call.1
= control target key start
LH: loop header
LB: loop body
LE: loop exit
PB: predicated region body
PF: predicated region fallthrough
CT: control target
= control target key end

     0   :  { %s29_s6 = smov [#allocation2]   ;;  %s30_s7 = smov 131072   ;;  %s48_s0 = inlined_call_operand.hbm [shape: f32[2,8,128], index: 0, kind: input, shape index: {}]   ;;  %s49_s1 = inlined_call_operand.hbm [shape: f32[2,8,128], index: 1, kind: output, shape index: {}]  }
   0x1   :  { %s31_s8 = smov 0  }
   0x2   :  { %12 = dma.general %s48_s0, 256, %s49_s1, %s29_s6, %s30_s7, [#allocation4], %s31_s8, 0  }
   0x3   :  { %27 = dma.done.wait [#allocation2], 256 }
   0x4   :  { %28 = vsyncadd [#allocation2], 4294967040 }
   0x5   :  { %17 = vsyncmov [#allocation2] }
   0x8   :  { %s18_s13 = vpop.sfrf %17 }
   0x9   :  { %p23_p0 = scmp.ne.s32.totalorder %s18_s13, 0 }
   0xb   :  { %22 = shalt.err (%p23_p0)  }

</bundles_post_ra>
